<compile_context>
chip_gen: v5e
topology: v5e:2x2
jax: 0.10.0
libtpu: 0.0.40
codegen_flags: <defaults>
</compile_context>

<pallas_src>
import math
import jax
import jax.numpy as jnp
from jax import lax
from jax.experimental import pallas as pl
from jax.experimental.pallas import tpu as pltpu

BN_EPS = 1e-5


def item_mlp_kernel(x_ref, w1_ref, b1_ref, w2_ref, b2_ref, o_ref):
    # x: (tm, E); w1: (E, H) bf16; b1, w2: (1, H) f32; b2: (1, 1) f32; o: (tm, 1) f32
    x = x_ref[...].astype(jnp.bfloat16)                              # cheap VPU cast in VMEM
    h = jnp.dot(x, w1_ref[...],
                preferred_element_type=jnp.float32) + b1_ref[...]    # Linear1 (MXU) + bias
    h = jnp.maximum(h, 0.0)                                          # ReLU (VPU)
    # BatchNorm (eval) already folded into w2/b2; Dropout (eval) = identity.
    # Linear(H -> 1): elementwise multiply (VPU) + lane reduction, f32 accumulation.
    o_ref[...] = jnp.sum(h * w2_ref[...], axis=-1, keepdims=True) + b2_ref[...]


def _auto_tile_m(n, max_tm=2048):
    """Row-tile heuristic: whole batch in one block when it fits (block dims equal
    to full array dims are always legal); otherwise 2048-row tiles (multiple of 8)
    to amortize the ~0.35 us per-grid-step pipeline overhead."""
    if n <= max_tm:
        return max(n, 1)
    return max_tm


def prepare_params(params):
    """One-time param prep: fold eval-mode BN into the second linear, pre-cast w1 to bf16."""
    scale = params["gamma"] * lax.rsqrt(params["running_var"] + BN_EPS)   # (1, H)
    shift = params["beta"] - params["running_mean"] * scale               # (1, H)
    w2 = params["w2"]                                                     # (H, 1)
    w2_row = (w2[:, 0] * scale[0]).reshape(1, -1).astype(jnp.float32)     # (1, H)
    b2 = (params["b2"] + shift @ w2).reshape(1, 1).astype(jnp.float32)    # (1, 1)
    return {
        "w1": params["w1"].astype(jnp.bfloat16),      # (E, H)
        "b1": params["b1"].astype(jnp.float32),       # (1, H)
        "w2_row": w2_row,                             # (1, H) = BN-scaled w2
        "b2": b2,                                     # (1, 1) = BN-shifted b2
    }


def item_module_forward(item_embed, prepared, *, tm=None):
    """item_embed: (N, E) -> (N, 1) float32 (eval-mode ItemModule forward)."""
    N, E = item_embed.shape
    H = prepared["w1"].shape[1]
    if tm is None:
        tm = _auto_tile_m(N)

    resident = lambda shape: pl.BlockSpec(shape, lambda i: (0, 0))

    return pl.pallas_call(
        item_mlp_kernel,
        out_shape=jax.ShapeDtypeStruct((N, 1), jnp.float32),
        grid_spec=pl.GridSpec(
            grid=(pl.cdiv(N, tm),),
            in_specs=[
                pl.BlockSpec((tm, E), lambda i: (i, 0)),   # x tile (the one streamed operand)
                resident((E, H)),                          # w1 (VMEM-resident)
                resident((1, H)),                          # b1
                resident((1, H)),                          # folded w2 row
                resident((1, 1)),                          # folded b2
            ],
            out_specs=pl.BlockSpec((tm, 1), lambda i: (i, 0)),
        ),
        compiler_params=pltpu.CompilerParams(
            dimension_semantics=("parallel",)),
    )(item_embed, prepared["w1"], prepared["b1"], prepared["w2_row"], prepared["b2"])


def init_params(key, embedding_dim, hidden_dim):
    """PyTorch-style Linear init; BN stats made non-trivial so the fold is exercised."""
    k1, k2, k3, k4, k5, k6, k7, k8 = jax.random.split(key, 8)
    bound1 = 1.0 / math.sqrt(embedding_dim)
    bound2 = 1.0 / math.sqrt(hidden_dim)
    w1 = jax.random.uniform(k1, (hidden_dim, embedding_dim),
                            minval=-bound1, maxval=bound1, dtype=jnp.float32)
    b1 = jax.random.uniform(k2, (hidden_dim,), minval=-bound1, maxval=bound1,
                            dtype=jnp.float32)
    w2 = jax.random.uniform(k3, (1, hidden_dim), minval=-bound2, maxval=bound2,
                            dtype=jnp.float32)
    b2 = jax.random.uniform(k4, (1,), minval=-bound2, maxval=bound2,
                            dtype=jnp.float32)
    gamma = jax.random.uniform(k5, (1, hidden_dim), minval=0.5, maxval=1.5, dtype=jnp.float32)
    beta = jax.random.uniform(k6, (1, hidden_dim), minval=-0.5, maxval=0.5, dtype=jnp.float32)
    rmean = jax.random.uniform(k7, (1, hidden_dim), minval=-0.5, maxval=0.5, dtype=jnp.float32)
    rvar = jax.random.uniform(k8, (1, hidden_dim), minval=0.5, maxval=1.5, dtype=jnp.float32)
    return {
        "w1": w1.T,                                   # (E, H)  pre-transposed
        "b1": b1.reshape(1, hidden_dim),
        "gamma": gamma, "beta": beta,
        "running_mean": rmean, "running_var": rvar,
        "w2": w2.T,                                   # (H, 1)  pre-transposed
        "b2": b2.reshape(1, 1),
    }


def reference_forward(x, p):
    # Original module semantics in f32: Linear -> ReLU -> BN(eval) -> Dropout(eval) -> Linear.
    h = x @ p["w1"] + p["b1"]
    h = jnp.maximum(h, 0.0)
    h = (h - p["running_mean"]) / jnp.sqrt(p["running_var"] + BN_EPS)
    h = h * p["gamma"] + p["beta"]
    return h @ p["w2"] + p["b2"]


if __name__ == "__main__":
    embedding_dim, hidden_dim, dropout_rate = 32, 64, 0.1

    key = jax.random.PRNGKey(0)
    kx, kp, kx2 = jax.random.split(key, 3)
    params = init_params(kp, embedding_dim, hidden_dim)
    prepared = prepare_params(params)

    # Case 1: small batch, single grid step (auto tile).
    batch = 8
    item_embed = jax.random.normal(kx, (batch, embedding_dim), dtype=jnp.float32)
    out = jax.block_until_ready(item_module_forward(item_embed, prepared))
    ref = reference_forward(item_embed, params)
    assert out.shape == (batch, 1), out.shape
    assert jnp.allclose(out, ref, atol=3e-2, rtol=3e-2), "mismatch vs reference (case 1)"

    # Case 2: multi-step grid with a padded last tile (N=40, tm=16 -> 3 steps).
    batch2 = 40
    item_embed2 = jax.random.normal(kx2, (batch2, embedding_dim), dtype=jnp.float32)
    out2 = jax.block_until_ready(item_module_forward(item_embed2, prepared, tm=16))
    ref2 = reference_forward(item_embed2, params)
    assert out2.shape == (batch2, 1), out2.shape
    assert jnp.allclose(out2, ref2, atol=3e-2, rtol=3e-2), "mismatch vs reference (case 2)"

    print("KERNEL_OK")
</pallas_src>

<mosaic_0001>
module attributes {stable_mosaic.version = 11 : i64} {
  func.func @item_mlp_kernel(%arg0: i32, %arg1: memref<8x32xf32, #tpu.memory_space<vmem>>, %arg2: memref<32x64xbf16, #tpu.memory_space<vmem>>, %arg3: memref<1x64xf32, #tpu.memory_space<vmem>>, %arg4: memref<1x64xf32, #tpu.memory_space<vmem>>, %arg5: memref<1x1xf32, #tpu.memory_space<vmem>>, %arg6: memref<8x1xf32, #tpu.memory_space<vmem>>) attributes {dimension_semantics = [#tpu.dimension_semantics<parallel>], iteration_bounds = array<i64: 1>, scalar_prefetch = 0 : i64, scratch_operands = 0 : i64, tpu.core_type = #tpu.core_type<tc>, window_params = [{transform_indices = @transform_0, window_bounds = array<i64: 8, 32>}, {pipeline_mode = #tpu.pipeline_mode<synchronous>, transform_indices = @transform_1, window_bounds = array<i64: 32, 64>}, {pipeline_mode = #tpu.pipeline_mode<synchronous>, transform_indices = @transform_2, window_bounds = array<i64: 1, 64>}, {pipeline_mode = #tpu.pipeline_mode<synchronous>, transform_indices = @transform_3, window_bounds = array<i64: 1, 64>}, {pipeline_mode = #tpu.pipeline_mode<synchronous>, transform_indices = @transform_4, window_bounds = array<i64: 1, 1>}, {transform_indices = @transform_5, window_bounds = array<i64: 8, 1>}]} {
    %c0 = arith.constant 0 : index
    %c0_0 = arith.constant 0 : index
    %0 = vector.load %arg1[%c0, %c0_0] : memref<8x32xf32, #tpu.memory_space<vmem>>, vector<8x32xf32>
    %1 = arith.truncf %0 : vector<8x32xf32> to vector<8x32xbf16>
    %c0_1 = arith.constant 0 : index
    %c0_2 = arith.constant 0 : index
    %2 = vector.load %arg2[%c0_1, %c0_2] : memref<32x64xbf16, #tpu.memory_space<vmem>>, vector<32x64xbf16>
    %cst = arith.constant dense<0.000000e+00> : vector<8x64xf32>
    %3 = tpu.matmul %1, %2, %cst {dimension_numbers = #tpu.dot_dimension_numbers<[1], [0], [0], [1], [0, 0, 1, 1], [], []>} : vector<8x32xbf16>, vector<32x64xbf16>, vector<8x64xf32> -> vector<8x64xf32>
    %c0_3 = arith.constant 0 : index
    %c0_4 = arith.constant 0 : index
    %4 = vector.load %arg3[%c0_3, %c0_4] : memref<1x64xf32, #tpu.memory_space<vmem>>, vector<1x64xf32>
    %5 = vector.broadcast %4 : vector<1x64xf32> to vector<8x64xf32>
    %6 = arith.addf %3, %5 : vector<8x64xf32>
    %cst_5 = arith.constant 0.000000e+00 : f32
    %7 = vector.broadcast %cst_5 : f32 to vector<8x64xf32>
    %8 = arith.maximumf %6, %7 : vector<8x64xf32>
    %c0_6 = arith.constant 0 : index
    %c0_7 = arith.constant 0 : index
    %9 = vector.load %arg4[%c0_6, %c0_7] : memref<1x64xf32, #tpu.memory_space<vmem>>, vector<1x64xf32>
    %10 = vector.broadcast %9 : vector<1x64xf32> to vector<8x64xf32>
    %11 = arith.mulf %8, %10 : vector<8x64xf32>
    %cst_8 = arith.constant dense<0.000000e+00> : vector<8xf32>
    %12 = vector.multi_reduction <add>, %11, %cst_8 [1] : vector<8x64xf32> to vector<8xf32>
    %13 = vector.shape_cast %12 : vector<8xf32> to vector<8x1xf32>
    %c0_9 = arith.constant 0 : index
    %c0_10 = arith.constant 0 : index
    %14 = vector.load %arg5[%c0_9, %c0_10] : memref<1x1xf32, #tpu.memory_space<vmem>>, vector<1x1xf32>
    %15 = vector.broadcast %14 : vector<1x1xf32> to vector<8x1xf32>
    %16 = arith.addf %13, %15 : vector<8x1xf32>
    %c0_11 = arith.constant 0 : index
    %c0_12 = arith.constant 0 : index
    %17 = vector.load %arg6[%c0_11, %c0_12] : memref<8x1xf32, #tpu.memory_space<vmem>>, vector<8x1xf32>
    tpu.vector_store %arg6[%c0_11, %c0_12], %16 {strides = array<i32>} : memref<8x1xf32, #tpu.memory_space<vmem>>, vector<8x1xf32>,
    return
  }
  func.func @transform_0(%arg0: i32) -> (i32, i32) {
    %c0_i32 = arith.constant 0 : i32
    %c0_i32_0 = arith.constant 0 : i32
    return %arg0, %c0_i32 : i32, i32
  }
  func.func @transform_1(%arg0: i32) -> (i32, i32) {
    %c0_i32 = arith.constant 0 : i32
    %c0_i32_0 = arith.constant 0 : i32
    %c0_i32_1 = arith.constant 0 : i32
    return %c0_i32, %c0_i32_0 : i32, i32
  }
  func.func @transform_2(%arg0: i32) -> (i32, i32) {
    %c0_i32 = arith.constant 0 : i32
    %c0_i32_0 = arith.constant 0 : i32
    %c0_i32_1 = arith.constant 0 : i32
    return %c0_i32, %c0_i32_0 : i32, i32
  }
  func.func @transform_3(%arg0: i32) -> (i32, i32) {
    %c0_i32 = arith.constant 0 : i32
    %c0_i32_0 = arith.constant 0 : i32
    %c0_i32_1 = arith.constant 0 : i32
    return %c0_i32, %c0_i32_0 : i32, i32
  }
  func.func @transform_4(%arg0: i32) -> (i32, i32) {
    %c0_i32 = arith.constant 0 : i32
    %c0_i32_0 = arith.constant 0 : i32
    %c0_i32_1 = arith.constant 0 : i32
    return %c0_i32, %c0_i32_0 : i32, i32
  }
  func.func @transform_5(%arg0: i32) -> (i32, i32) {
    %c0_i32 = arith.constant 0 : i32
    %c0_i32_0 = arith.constant 0 : i32
    return %arg0, %c0_i32 : i32, i32
  }
}

</mosaic_0001>

<bundles_post_ra>
// kernel: tpu_custom_call.1
= control target key start
LH: loop header
LB: loop body
LE: loop exit
PB: predicated region body
PF: predicated region fallthrough
CT: control target
= control target key end

     0   :  { %s237_s0 = inlined_call_operand.hbm [shape: f32[8,32], index: 0, kind: input, shape index: {}]   ;;  %s238_s1 = inlined_call_operand.hbm [shape: bf16[32,64], index: 1, kind: input, shape index: {}]   ;;  %s239_s2 = inlined_call_operand.vmem [shape: f32[1,64], index: 2, kind: input, shape index: {}]   ;;  %s240_s3 = inlined_call_operand.vmem [shape: f32[1,64], index: 3, kind: input, shape index: {}]   ;;  %s241_s4 = inlined_call_operand.<no memory space> [shape: f32[1,1], index: 4, kind: input, shape index: {}]   ;;  %s242_s5 = inlined_call_operand.vmem [shape: f32[8,1], index: 5, kind: output, shape index: {}]  }
   0x1   :  { %v10_v0 = vstv %s241_s4 }
   0x2   :  { %11 = vst [vmem:[#allocation2] sm:$0x1] %v10_v0 }
   0x3   :  { %12 = vsyncpa [#allocation4], 0  ;;  %s19_s22 = sshll.u32 %s237_s0, 4  ;;  %s20_s22 = int_to_ptr.hbm [resolvable:$true] %s19_s22 }
   0x4   :  { %13 = vsyncpa [#allocation6], 0  ;;  %s185_s23 = smov [#allocation3]   ;;  %s29_s27 = sshll.u32 %s238_s1, 4  ;;  %s30_s27 = int_to_ptr.hbm [resolvable:$true] %s29_s27 }
   0x5   :  { %s21_s24 = sshll.u32 %s185_s23, 4  ;;  %s186_s28 = smov [#allocation5]   ;;  %s22_s24 = int_to_ptr.vmem [resolvable:$true] %s21_s24 }
   0x6   :  { %24 = dma.hbm_to_vmem [thread:$0]  %s20_s22, 128, %s22_s24, [#allocation4]  }
   0x7   :  { %s31_s29 = sshll.u32 %s186_s28, 4  ;;  %s187_s4 = smov 64   ;;  %s32_s29 = int_to_ptr.vmem [resolvable:$true] %s31_s29 }
   0x8   :  { %s188_s30 = smov 4  }
   0x9   :  { %37 = dma.hbm_to_vmem [thread:$0]  %s30_s27, 256, %s32_s29, [#allocation6], %s187_s4, %s187_s4, %s188_s30  }
   0xa   :  { %181 = dma.done.wait [#allocation4], 128  }
   0xb   :  { %182 = vsyncadd [#allocation4], 4294967168 }
   0xc   :  { %183 = dma.done.wait [#allocation6], 256  }
   0xd   :  { %184 = vsyncadd [#allocation6], 4294967040  ;;  %v125_v1 = vld [vmem:[#allocation5 + $0x8] sm:$0xff]  ;;  %v124_v2 = vld [vmem:[#allocation5] sm:$0xff]  ;;  %vm75_vm0 = vcmask 261120   ;;  %vm98_vm1 = vcmask 523264  }
   0xe   :  { %85 = vmatpush.bf16.msra.mxu0 %v125_v1  ;;  %v53_v3 = vld [vmem:[#allocation3] sm:$0xff]  ;;  %v130_v5 = vld [vmem:[%s239_s2] ss:$0 sm:$0xff]  ;;  %vm107_vm2 = vcmask 7168  }
   0xf   :  { %v54_v4 = vpack.c.bf16 %v53_v3, %v53_v3  ;;  %v131_v8 = vld [vmem:[%s240_s3] ss:$0 sm:$0xff] }
  0x10   :  { %v132_v13 = vld [vmem:[#allocation2] ss:$0 sm:$0xff] }
  0x12   :  { %86 = vmatpush.bf16.msra.mxu0 %v124_v2 }
  0x15   :  { %123 = vmatmul.msk.bf16.vlgmr.msra.gmra.mxu0 %vm75_vm0, %v54_v4 }
  0x92   :  { %v88_v6 = vpop.f32.mrf.mxu0 }
  0x93   :  { %v89_v7 = vadd.f32 %v130_v5, %v88_v6 }
  0x95   :  { %v92_v9 = vmax.f32 %v89_v7, 0.0 }
  0x97   :  { %v97_v10 = vmul.f32 %v131_v8, %v92_v9 }
  0x99   :  { %v99_v11 = vsel %vm98_vm1, %v97_v10, 0.0 }
  0x9a   :  { %v90_v12 = vpop.f32.mrf.mxu0  ;;  %100 = vadd.xlane.f32.xlu0 %v99_v11 }
 0x10d   :  { %v101_v14 = vpop.xlane.xlu0 %100 }
 0x10e   :  { %v106_v15 = vadd.f32 %v132_v13, %v101_v14 }
 0x110   :  { %108 = vst.msk [vmem:[%s242_s5] sm:$0xff] %vm107_vm2, %v106_v15 }
 0x111   :  { %113 = vsyncpa [#allocation4], 1 }
 0x112   :  { %114 = vsyncpa [#allocation6], 1 }

</bundles_post_ra>
